<compile_context>
chip_gen: v5e
topology: v5e:2x2
jax: 0.10.0
libtpu: 0.0.40
codegen_flags: <defaults>
</compile_context>

<pallas_src>
import jax
import jax.numpy as jnp
from jax.experimental import pallas as pl
from jax.experimental.pallas import tpu as pltpu


def pnet_kernel(t_ref, w1_ref, b1_ref, w2_ref, b2_ref, w3_ref, b3_ref, o_ref):
    """One N-tile of the transposed MLP.

    Shapes (TN = lane tile):
      t:  (1, TN)    w1: (32, 1)   b1: (32, 1)
      h1: (32, TN)   w2: (32, 32)  b2: (32, 1)
      h2: (32, TN)   w3: (32, 1)   b3: (1, 1)
      out:(1, TN)
    """
    t = t_ref[...]                                              # (1, TN)

    # Layer 1: rank-1 outer product -> pure VPU broadcast FMA + EUP tanh.
    h1 = jnp.tanh(w1_ref[...] * t + b1_ref[...])                # (32, TN)

    # Layer 2: the only real matmul (32x32 @ 32xTN) -> MXU, f32 accumulation.
    h2 = jnp.tanh(
        jnp.dot(w2_ref[...], h1, preferred_element_type=jnp.float32)
        + b2_ref[...]
    )                                                           # (32, TN)

    # Layer 3: weighted 32-wide sublane reduction -> VPU mul + XLU reduce.
    out = jnp.sum(w3_ref[...] * h2, axis=0, keepdims=True) + b3_ref[...]
    o_ref[...] = out.astype(o_ref.dtype)                        # (1, TN)


def pnet_forward(t, params, *, tile_n=2048):
    """t: (N, 1) float32 -> (N, 1) float32. params in PyTorch-native shapes."""
    w1, b1, w2, b2, w3, b3 = params
    n = t.shape[0]

    # Kernel layout: batch on lanes, weights/biases as columns.
    t_t = t.reshape(1, n).astype(jnp.float32)   # (1, N)
    w1c = w1.reshape(32, 1).astype(jnp.float32)
    b1c = b1.reshape(32, 1).astype(jnp.float32)
    w2m = w2.astype(jnp.float32)                # (32, 32), used as W @ x_col
    b2c = b2.reshape(32, 1).astype(jnp.float32)
    w3c = w3.reshape(32, 1).astype(jnp.float32)
    b3c = b3.reshape(1, 1).astype(jnp.float32)

    # Lane tile must be a multiple of 128. For small batches, shrink the tile
    # to the batch rounded up to 128 -> single grid step, minimal padding.
    n_round = pl.cdiv(n, 128) * 128
    tile_n = max(128, min(tile_n, n_round))
    n_blocks = pl.cdiv(n, tile_n)
    n_pad = n_blocks * tile_n
    if n_pad != n:
        t_t = jnp.pad(t_t, ((0, 0), (0, n_pad - n)))

    out_t = pl.pallas_call(
        pnet_kernel,
        out_shape=jax.ShapeDtypeStruct((1, n_pad), jnp.float32),
        grid_spec=pltpu.PrefetchScalarGridSpec(
            num_scalar_prefetch=0,
            grid=(n_blocks,),
            in_specs=[
                pl.BlockSpec((1, tile_n), lambda i: (0, i)),   # t^T tile (streamed)
                pl.BlockSpec((32, 1), lambda i: (0, 0)),       # w1 column (resident)
                pl.BlockSpec((32, 1), lambda i: (0, 0)),       # b1 column
                pl.BlockSpec((32, 32), lambda i: (0, 0)),      # w2
                pl.BlockSpec((32, 1), lambda i: (0, 0)),       # b2 column
                pl.BlockSpec((32, 1), lambda i: (0, 0)),       # w3 column
                pl.BlockSpec((1, 1), lambda i: (0, 0)),        # b3
            ],
            out_specs=pl.BlockSpec((1, tile_n), lambda i: (0, i)),
        ),
        compiler_params=pltpu.CompilerParams(
            dimension_semantics=("parallel",),   # lets v7x shard over 2 TCs
        ),
    )(t_t, w1c, b1c, w2m, b2c, w3c, b3c)

    return out_t[:, :n].reshape(n, 1)


def init_params(key):
    """Deterministic init with PyTorch nn.Linear shapes and init bounds."""
    k1, k2, k3, k4, k5, k6 = jax.random.split(key, 6)

    def uniform(k, shape, fan_in):
        bound = 1.0 / jnp.sqrt(fan_in)
        return jax.random.uniform(k, shape, jnp.float32, -bound, bound)

    w1 = uniform(k1, (32, 1), 1.0)    # Linear(1, 32).weight
    b1 = uniform(k2, (32,), 1.0)      # Linear(1, 32).bias
    w2 = uniform(k3, (32, 32), 32.0)  # Linear(32, 32).weight
    b2 = uniform(k4, (32,), 32.0)     # Linear(32, 32).bias
    w3 = uniform(k5, (1, 32), 32.0)   # Linear(32, 1).weight
    b3 = uniform(k6, (1,), 32.0)      # Linear(32, 1).bias
    return (w1, b1, w2, b2, w3, b3)


def pnet_reference(t, params):
    """Pure-JAX reference matching the PyTorch forward exactly."""
    w1, b1, w2, b2, w3, b3 = params
    h1 = jnp.tanh(t @ w1.T + b1)
    h2 = jnp.tanh(h1 @ w2.T + b2)
    return h2 @ w3.T + b3


if __name__ == "__main__":
    key = jax.random.PRNGKey(0)
    k_params, k_input = jax.random.split(key)

    params = init_params(k_params)

    # Batch of collocation times; non-multiple of 128 to exercise the padding
    # path (PINN training batches many collocation points per call).
    n = 1000
    t = jax.random.uniform(k_input, (n, 1), jnp.float32)

    out = jax.block_until_ready(pnet_forward(t, params))
    ref = pnet_reference(t, params)

    assert out.shape == (n, 1)
    assert jnp.allclose(out, ref, atol=1e-5, rtol=1e-4), float(
        jnp.max(jnp.abs(out - ref))
    )

    print("KERNEL_OK")
</pallas_src>

<mosaic_0001>
module attributes {stable_mosaic.version = 11 : i64} {
  func.func @pnet_kernel(%arg0: i32, %arg1: memref<1x1024xf32, #tpu.memory_space<vmem>>, %arg2: memref<32x1xf32, #tpu.memory_space<vmem>>, %arg3: memref<32x1xf32, #tpu.memory_space<vmem>>, %arg4: memref<32x32xf32, #tpu.memory_space<vmem>>, %arg5: memref<32x1xf32, #tpu.memory_space<vmem>>, %arg6: memref<32x1xf32, #tpu.memory_space<vmem>>, %arg7: memref<1x1xf32, #tpu.memory_space<vmem>>, %arg8: memref<1x1024xf32, #tpu.memory_space<vmem>>) attributes {dimension_semantics = [#tpu.dimension_semantics<parallel>], iteration_bounds = array<i64: 1>, scalar_prefetch = 0 : i64, scratch_operands = 0 : i64, tpu.core_type = #tpu.core_type<tc>, window_params = [{transform_indices = @transform_0, window_bounds = array<i64: 1, 1024>}, {pipeline_mode = #tpu.pipeline_mode<synchronous>, transform_indices = @transform_1, window_bounds = array<i64: 32, 1>}, {pipeline_mode = #tpu.pipeline_mode<synchronous>, transform_indices = @transform_2, window_bounds = array<i64: 32, 1>}, {pipeline_mode = #tpu.pipeline_mode<synchronous>, transform_indices = @transform_3, window_bounds = array<i64: 32, 32>}, {pipeline_mode = #tpu.pipeline_mode<synchronous>, transform_indices = @transform_4, window_bounds = array<i64: 32, 1>}, {pipeline_mode = #tpu.pipeline_mode<synchronous>, transform_indices = @transform_5, window_bounds = array<i64: 32, 1>}, {pipeline_mode = #tpu.pipeline_mode<synchronous>, transform_indices = @transform_6, window_bounds = array<i64: 1, 1>}, {transform_indices = @transform_7, window_bounds = array<i64: 1, 1024>}]} {
    %c0 = arith.constant 0 : index
    %c0_0 = arith.constant 0 : index
    %0 = vector.load %arg1[%c0, %c0_0] : memref<1x1024xf32, #tpu.memory_space<vmem>>, vector<1x1024xf32>
    %c0_1 = arith.constant 0 : index
    %c0_2 = arith.constant 0 : index
    %1 = vector.load %arg2[%c0_1, %c0_2] : memref<32x1xf32, #tpu.memory_space<vmem>>, vector<32x1xf32>
    %2 = vector.broadcast %1 : vector<32x1xf32> to vector<32x1024xf32>
    %3 = vector.broadcast %0 : vector<1x1024xf32> to vector<32x1024xf32>
    %4 = arith.mulf %2, %3 : vector<32x1024xf32>
    %c0_3 = arith.constant 0 : index
    %c0_4 = arith.constant 0 : index
    %5 = vector.load %arg3[%c0_3, %c0_4] : memref<32x1xf32, #tpu.memory_space<vmem>>, vector<32x1xf32>
    %6 = vector.broadcast %5 : vector<32x1xf32> to vector<32x1024xf32>
    %7 = arith.addf %4, %6 : vector<32x1024xf32>
    %8 = math.tanh %7 : vector<32x1024xf32>
    %c0_5 = arith.constant 0 : index
    %c0_6 = arith.constant 0 : index
    %9 = vector.load %arg4[%c0_5, %c0_6] : memref<32x32xf32, #tpu.memory_space<vmem>>, vector<32x32xf32>
    %cst = arith.constant dense<0.000000e+00> : vector<32x1024xf32>
    %10 = tpu.matmul %9, %8, %cst {dimension_numbers = #tpu.dot_dimension_numbers<[1], [0], [0], [1], [0, 0, 1, 1], [], []>} : vector<32x32xf32>, vector<32x1024xf32>, vector<32x1024xf32> -> vector<32x1024xf32>
    %c0_7 = arith.constant 0 : index
    %c0_8 = arith.constant 0 : index
    %11 = vector.load %arg5[%c0_7, %c0_8] : memref<32x1xf32, #tpu.memory_space<vmem>>, vector<32x1xf32>
    %12 = vector.broadcast %11 : vector<32x1xf32> to vector<32x1024xf32>
    %13 = arith.addf %10, %12 : vector<32x1024xf32>
    %14 = math.tanh %13 : vector<32x1024xf32>
    %c0_9 = arith.constant 0 : index
    %c0_10 = arith.constant 0 : index
    %15 = vector.load %arg6[%c0_9, %c0_10] : memref<32x1xf32, #tpu.memory_space<vmem>>, vector<32x1xf32>
    %16 = vector.broadcast %15 : vector<32x1xf32> to vector<32x1024xf32>
    %17 = arith.mulf %16, %14 : vector<32x1024xf32>
    %cst_11 = arith.constant dense<0.000000e+00> : vector<1024xf32>
    %18 = vector.multi_reduction <add>, %17, %cst_11 [0] : vector<32x1024xf32> to vector<1024xf32>
    %19 = vector.shape_cast %18 : vector<1024xf32> to vector<1x1024xf32>
    %c0_12 = arith.constant 0 : index
    %c0_13 = arith.constant 0 : index
    %20 = vector.load %arg7[%c0_12, %c0_13] : memref<1x1xf32, #tpu.memory_space<vmem>>, vector<1x1xf32>
    %21 = vector.broadcast %20 : vector<1x1xf32> to vector<1x1024xf32>
    %22 = arith.addf %19, %21 : vector<1x1024xf32>
    %c0_14 = arith.constant 0 : index
    %c0_15 = arith.constant 0 : index
    %23 = vector.load %arg8[%c0_14, %c0_15] : memref<1x1024xf32, #tpu.memory_space<vmem>>, vector<1x1024xf32>
    tpu.vector_store %arg8[%c0_14, %c0_15], %22 {strides = array<i32>} : memref<1x1024xf32, #tpu.memory_space<vmem>>, vector<1x1024xf32>,
    return
  }
  func.func @transform_0(%arg0: i32) -> (i32, i32) {
    %c0_i32 = arith.constant 0 : i32
    %c0_i32_0 = arith.constant 0 : i32
    return %c0_i32, %arg0 : i32, i32
  }
  func.func @transform_1(%arg0: i32) -> (i32, i32) {
    %c0_i32 = arith.constant 0 : i32
    %c0_i32_0 = arith.constant 0 : i32
    %c0_i32_1 = arith.constant 0 : i32
    return %c0_i32, %c0_i32_0 : i32, i32
  }
  func.func @transform_2(%arg0: i32) -> (i32, i32) {
    %c0_i32 = arith.constant 0 : i32
    %c0_i32_0 = arith.constant 0 : i32
    %c0_i32_1 = arith.constant 0 : i32
    return %c0_i32, %c0_i32_0 : i32, i32
  }
  func.func @transform_3(%arg0: i32) -> (i32, i32) {
    %c0_i32 = arith.constant 0 : i32
    %c0_i32_0 = arith.constant 0 : i32
    %c0_i32_1 = arith.constant 0 : i32
    return %c0_i32, %c0_i32_0 : i32, i32
  }
  func.func @transform_4(%arg0: i32) -> (i32, i32) {
    %c0_i32 = arith.constant 0 : i32
    %c0_i32_0 = arith.constant 0 : i32
    %c0_i32_1 = arith.constant 0 : i32
    return %c0_i32, %c0_i32_0 : i32, i32
  }
  func.func @transform_5(%arg0: i32) -> (i32, i32) {
    %c0_i32 = arith.constant 0 : i32
    %c0_i32_0 = arith.constant 0 : i32
    %c0_i32_1 = arith.constant 0 : i32
    return %c0_i32, %c0_i32_0 : i32, i32
  }
  func.func @transform_6(%arg0: i32) -> (i32, i32) {
    %c0_i32 = arith.constant 0 : i32
    %c0_i32_0 = arith.constant 0 : i32
    %c0_i32_1 = arith.constant 0 : i32
    return %c0_i32, %c0_i32_0 : i32, i32
  }
  func.func @transform_7(%arg0: i32) -> (i32, i32) {
    %c0_i32 = arith.constant 0 : i32
    %c0_i32_0 = arith.constant 0 : i32
    return %c0_i32, %arg0 : i32, i32
  }
}

</mosaic_0001>

<bundles_post_ra>
// kernel: tpu_custom_call.1
= control target key start
LH: loop header
LB: loop body
LE: loop exit
PB: predicated region body
PF: predicated region fallthrough
CT: control target
= control target key end

     0   :  { %s1221_s0 = inlined_call_operand.vmem [shape: f32[1,1024], index: 0, kind: input, shape index: {}]   ;;  %s1222_s1 = inlined_call_operand.vmem [shape: f32[32,1], index: 1, kind: input, shape index: {}]   ;;  %s1223_s2 = inlined_call_operand.vmem [shape: f32[32,1], index: 2, kind: input, shape index: {}]   ;;  %s1224_s3 = inlined_call_operand.vmem [shape: f32[32,32], index: 3, kind: input, shape index: {}]   ;;  %s1225_s4 = inlined_call_operand.vmem [shape: f32[32,1], index: 4, kind: input, shape index: {}]   ;;  %s1226_s5 = inlined_call_operand.vmem [shape: f32[32,1], index: 5, kind: input, shape index: {}]   ;;  %s1227_s6 = inlined_call_operand.<no memory space> [shape: f32[1,1], index: 6, kind: input, shape index: {}]   ;;  %s1228_s7 = inlined_call_operand.hbm [shape: f32[1,1024], index: 7, kind: output, shape index: {}]  }
   0x1   :  { %v12_v0 = vstv %s1227_s6 }
   0x2   :  { %13 = vst [vmem:[#allocation2] sm:$0x1] %v12_v0 }
   0x3   :  { %v105_v1 = vld [vmem:[%s1223_s2 + $0x10] sm:$0xff]  ;;  %v106_v2 = vld [vmem:[%s1223_s2 + $0x18] sm:$0xff]  ;;  %v877_v4 = vmov 0  }
   0x4   :  { %v33_v3 = vld [vmem:[%s1222_s1 + $0x18] sm:$0xff]  ;;  %722 = vset.pattern.permute.xlu2 %v877_v4  ;;  %721 = vset.pattern.permute.xlu1 %v877_v4 }
   0x5   :  { %720 = vset.pattern.permute.xlu0 %v877_v4  ;;  %119 = vperm.xlu2 %722, %v105_v1  }
   0x6   :  { %124 = vperm.xlu1 %721, %v106_v2   ;;  %51 = vperm.xlu0 %720, %v33_v3  }
   0x7   :  { %14 = vsyncpa [#allocation4], 0  ;;  %v30_v5 = vld [vmem:[%s1222_s1] sm:$0xff]  ;;  %v32_v6 = vld [vmem:[%s1222_s1 + $0x10] sm:$0xff]  ;;  %vm219_vm0 = vcmask 261120   ;;  %vm654_vm1 = vcmask 1040384  }
   0x8   :  { %v31_v7 = vld [vmem:[%s1222_s1 + $0x8] sm:$0xff]  ;;  %v195_v8 = vld [vmem:[%s1225_s4] sm:$0xff]  ;;  %v198_v11 = vld [vmem:[%s1225_s4 + $0x18] sm:$0xff]  ;;  %vm656_vm2 = vcmask 1042434   ;;  %vm660_vm3 = vcmask 1044484   ;;  %vm662_vm4 = vcmask 1046534  }
   0x9   :  { %v104_v9 = vld [vmem:[%s1223_s2 + $0x8] sm:$0xff]  ;;  %v103_v10 = vld [vmem:[%s1223_s2] sm:$0xff]  ;;  %v197_v13 = vld [vmem:[%s1225_s4 + $0x10] sm:$0xff]  ;;  %vm658_vm5 = vcmask 1041408   ;;  %vm664_vm6 = vcmask 1045508   ;;  %s677_s18 = sshll.u32 %s1228_s7, 4  ;;  %s678_s18 = int_to_ptr.hbm [resolvable:$true] %s677_s18 }
   0xa   :  { %v196_v12 = vld [vmem:[%s1225_s4 + $0x8] sm:$0xff]  ;;  %v498_v14 = vld [vmem:[%s1226_s5 + $0x10] sm:$0xff]  ;;  %v496_v15 = vld [vmem:[%s1226_s5] sm:$0xff]  ;;  %vm666_vm7 = vcmask 1043456  }
   0xb   :  { %v497_v16 = vld [vmem:[%s1226_s5 + $0x8] sm:$0xff]  ;;  %v499_v17 = vld [vmem:[%s1226_s5 + $0x18] sm:$0xff]  ;;  %v624_v18 = vld [vmem:[#allocation2] sm:$0x1] }
   0xc   :  { %v29_v19 = vld [vmem:[%s1221_s0] sm:$0xff] }
   0xd   :  { %36 = vperm.xlu2 %722, %v30_v5   ;;  %v55_v20 = vperm.slane %v29_v19, 0  ;;  %v56_v21 = vperm.slane %v29_v19, 1  ;;  %v57_v22 = vperm.slane %v29_v19, 2  ;;  %v973_v23 = vperm.slane %v29_v19, 3 }
   0xe   :  { %46 = vperm.xlu0 %720, %v32_v6   ;;  %41 = vperm.xlu1 %721, %v31_v7   ;;  %v990_v35 = vperm.slane %v29_v19, 4  ;;  %v1008_v52 = vperm.slane %v29_v19, 5  ;;  %v1022_v61 = vperm.slane %v29_v19, 6  ;;  %v1027_v1 = vperm.slane %v29_v19, 7 }
  0x15   :  { %201 = vperm.xlu2 %722, %v195_v8  }
  0x16   :  { %114 = vperm.xlu0 %720, %v104_v9   ;;  %109 = vperm.xlu1 %721, %v103_v10  }
  0x1d   :  { %216 = vperm.xlu2 %722, %v198_v11  }
  0x1e   :  { %206 = vperm.xlu0 %720, %v196_v12   ;;  %211 = vperm.xlu1 %721, %v197_v13  }
  0x25   :  { %512 = vperm.xlu2 %722, %v498_v14  }
  0x26   :  { %502 = vperm.xlu0 %720, %v496_v15   ;;  %507 = vperm.xlu1 %721, %v497_v16  }
  0x2e   :  { %517 = vperm.xlu0 %720, %v499_v17   ;;  %627 = vperm.xlu1 %721, %v624_v18  }
  0x5f   :  { %v988_v34 = vpop.permute.xlu2 %119 }
  0x67   :  { %v1010_v53 = vpop.permute.xlu2 %36 }
  0x68   :  { %v71_v60 = vmul.f32 %v55_v20, %v1010_v53  ;;  %v72_v3 = vmul.f32 %v56_v21, %v1010_v53  ;;  %v73_v6 = vmul.f32 %v57_v22, %v1010_v53  ;;  %v74_v10 = vmul.f32 %v973_v23, %v1010_v53 }
  0x78   :  { %v975_v24 = vpop.permute.xlu1 %124  ;;  %v977_v25 = vpop.permute.xlu0 %51 }
  0x79   :  { %v95_v26 = vmul.f32 %v55_v20, %v977_v25  ;;  %v96_v27 = vmul.f32 %v56_v21, %v977_v25  ;;  %v97_v28 = vmul.f32 %v57_v22, %v977_v25  ;;  %v98_v29 = vmul.f32 %v973_v23, %v977_v25 }
  0x7a   :  { %v99_v42 = vmul.f32 %v990_v35, %v977_v25  ;;  %v100_v7 = vmul.f32 %v1008_v52, %v977_v25  ;;  %v101_v11 = vmul.f32 %v1022_v61, %v977_v25  ;;  %v102_v14 = vmul.f32 %v1027_v1, %v977_v25 }
  0x7b   :  { %v151_v30 = vadd.f32 %v975_v24, %v95_v26  ;;  %v152_v31 = vadd.f32 %v975_v24, %v96_v27  ;;  %v153_v32 = vadd.f32 %v975_v24, %v97_v28  ;;  %v154_v33 = vadd.f32 %v975_v24, %v98_v29 }
  0x7c   :  { %v155_v51 = vadd.f32 %v975_v24, %v99_v42  ;;  %v156_v18 = vadd.f32 %v975_v24, %v100_v7  ;;  %v158_v25 = vadd.f32 %v975_v24, %v102_v14  ;;  %v194_v7 = vld [vmem:[%s1224_s3 + $0x18] sm:$0xff] }
  0x7d   :  { %723 = vtanh.f32 %v151_v30 }
  0x7e   :  { %725 = vtanh.f32 %v152_v31 }
  0x7f   :  { %727 = vtanh.f32 %v153_v32  ;;  %v1060_v32 = vld [vmem:[%s1224_s3] sm:$0xff] }
  0x80   :  { %v992_v36 = vpop.permute.xlu0 %46  ;;  %v994_v37 = vpop.permute.xlu1 %41  ;;  %729 = vtanh.f32 %v154_v33 }
  0x81   :  { %v87_v38 = vmul.f32 %v55_v20, %v992_v36  ;;  %v88_v39 = vmul.f32 %v56_v21, %v992_v36  ;;  %v89_v40 = vmul.f32 %v57_v22, %v992_v36  ;;  %v90_v41 = vmul.f32 %v973_v23, %v992_v36 }
  0x82   :  { %v79_v54 = vmul.f32 %v55_v20, %v994_v37  ;;  %v80_v55 = vmul.f32 %v56_v21, %v994_v37  ;;  %v81_v56 = vmul.f32 %v57_v22, %v994_v37  ;;  %v82_v59 = vmul.f32 %v973_v23, %v994_v37 }
  0x83   :  { %v724_v43 = vpop.eup %723  ;;  %v143_v44 = vadd.f32 %v988_v34, %v87_v38  ;;  %v144_v45 = vadd.f32 %v988_v34, %v88_v39  ;;  %v145_v46 = vadd.f32 %v988_v34, %v89_v40  ;;  %v146_v48 = vadd.f32 %v988_v34, %v90_v41 }
  0x84   :  { %v726_v47 = vpop.eup %725  ;;  %244 = vmatpush.msra.mxu0 %v724_v43  ;;  %v91_v17 = vmul.f32 %v990_v35, %v992_v36  ;;  %v92_v19 = vmul.f32 %v1008_v52, %v992_v36  ;;  %v157_v21 = vadd.f32 %v975_v24, %v101_v11  ;;  %v93_v22 = vmul.f32 %v1022_v61, %v992_v36 }
  0x85   :  { %v728_v49 = vpop.eup %727  ;;  %273 = vmatpush.msra.mxu1 %v726_v47  ;;  %731 = vtanh.f32 %v143_v44  ;;  %v94_v26 = vmul.f32 %v1027_v1, %v992_v36  ;;  %v83_v33 = vmul.f32 %v990_v35, %v994_v37  ;;  %v84_v39 = vmul.f32 %v1008_v52, %v994_v37 }
  0x86   :  { %v730_v50 = vpop.eup %729  ;;  %302 = vmatpush.msra.mxu2 %v728_v49  ;;  %733 = vtanh.f32 %v144_v45  ;;  %v147_v28 = vadd.f32 %v988_v34, %v91_v17  ;;  %v148_v30 = vadd.f32 %v988_v34, %v92_v19  ;;  %v149_v24 = vadd.f32 %v988_v34, %v93_v22  ;;  %v1137_v22 = vpop.permute.xlu2 %201 }
  0x87   :  { %331 = vmatpush.msra.mxu3 %v730_v50  ;;  %735 = vtanh.f32 %v145_v46  ;;  %v150_v38 = vadd.f32 %v988_v34, %v94_v26  ;;  %v85_v42 = vmul.f32 %v1022_v61, %v994_v37  ;;  %v86_v34 = vmul.f32 %v1027_v1, %v994_v37 }
  0x88   :  { %v1015_v57 = vpop.permute.xlu0 %114  ;;  %v1017_v58 = vpop.permute.xlu1 %109  ;;  %737 = vtanh.f32 %v146_v48  ;;  %v75_v47 = vmul.f32 %v990_v35, %v1010_v53  ;;  %v76_v37 = vmul.f32 %v1008_v52, %v1010_v53  ;;  %v77_v35 = vmul.f32 %v1022_v61, %v1010_v53 }
  0x89   :  { %v135_v62 = vadd.f32 %v1015_v57, %v79_v54  ;;  %v136_v63 = vadd.f32 %v1015_v57, %v80_v55  ;;  %v137_v0 = vadd.f32 %v1015_v57, %v81_v56  ;;  %v138_v2 = vadd.f32 %v1015_v57, %v82_v59  ;;  %v192_v59 = vld [vmem:[%s1224_s3 + $0x8] sm:$0xff] }
  0x8a   :  { %739 = vtanh.f32 %v155_v51  ;;  %v127_v5 = vadd.f32 %v1017_v58, %v71_v60  ;;  %v128_v9 = vadd.f32 %v1017_v58, %v72_v3  ;;  %v129_v13 = vadd.f32 %v1017_v58, %v73_v6  ;;  %v193_v3 = vld [vmem:[%s1224_s3 + $0x10] sm:$0xff]  ;;  %s878_s3 = smov [#allocation3]  }
  0x8b   :  { %v732_v4 = vpop.eup %731  ;;  %741 = vtanh.f32 %v135_v62  ;;  %v130_v16 = vadd.f32 %v1017_v58, %v74_v10  ;;  %v139_v41 = vadd.f32 %v1015_v57, %v83_v33  ;;  %v140_v44 = vadd.f32 %v1015_v57, %v84_v39  ;;  %s675_s15 = sshll.u32 %s878_s3, 4  ;;  %s676_s15 = int_to_ptr.vmem [resolvable:$true] %s675_s15 }
  0x8c   :  { %v734_v8 = vpop.eup %733  ;;  %245 = vmatpush.msra.mxu0 %v732_v4  ;;  %743 = vtanh.f32 %v136_v63  ;;  %v141_v46 = vadd.f32 %v1015_v57, %v85_v42  ;;  %v142_v49 = vadd.f32 %v1015_v57, %v86_v34  ;;  %v131_v51 = vadd.f32 %v1017_v58, %v75_v47 }
  0x8d   :  { %v736_v12 = vpop.eup %735  ;;  %274 = vmatpush.msra.mxu1 %v734_v8  ;;  %745 = vtanh.f32 %v137_v0  ;;  %v132_v55 = vadd.f32 %v1017_v58, %v76_v37  ;;  %v78_v52 = vmul.f32 %v1027_v1, %v1010_v53  ;;  %v133_v57 = vadd.f32 %v1017_v58, %v77_v35 }
  0x8e   :  { %v738_v15 = vpop.eup %737  ;;  %303 = vmatpush.msra.mxu2 %v736_v12  ;;  %747 = vtanh.f32 %v138_v2 }
  0x8f   :  { %332 = vmatpush.msra.mxu3 %v738_v15  ;;  %749 = vtanh.f32 %v127_v5  ;;  %v134_v61 = vadd.f32 %v1017_v58, %v78_v52 }
  0x90   :  { %v740_v20 = vpop.eup %739  ;;  %751 = vtanh.f32 %v128_v9 }
  0x91   :  { %v742_v23 = vpop.eup %741  ;;  %753 = vtanh.f32 %v129_v13 }
  0x92   :  { %v744_v27 = vpop.eup %743  ;;  %246 = vmatpush.msra.mxu0 %v742_v23  ;;  %755 = vtanh.f32 %v130_v16  ;;  %v1139_v23 = vpop.permute.xlu0 %206 }
  0x93   :  { %v746_v29 = vpop.eup %745  ;;  %275 = vmatpush.msra.mxu1 %v744_v27  ;;  %757 = vtanh.f32 %v156_v18 }
  0x94   :  { %v748_v31 = vpop.eup %747  ;;  %304 = vmatpush.msra.mxu2 %v746_v29  ;;  %759 = vtanh.f32 %v157_v21 }
  0x95   :  { %v750_v36 = vpop.eup %749  ;;  %333 = vmatpush.msra.mxu3 %v748_v31  ;;  %761 = vtanh.f32 %v158_v25 }
  0x96   :  { %v752_v40 = vpop.eup %751  ;;  %247 = vmatpush.msra.mxu0 %v750_v36  ;;  %763 = vtanh.f32 %v147_v28  ;;  %v1147_v36 = vpop.permute.xlu1 %211 }
  0x97   :  { %v754_v43 = vpop.eup %753  ;;  %276 = vmatpush.msra.mxu1 %v752_v40  ;;  %686 = vmatmul.msk.f32.vlgmr.msra.gmra.mxu0 %vm219_vm0, %v1060_v32  ;;  %765 = vtanh.f32 %v148_v30  ;;  %v1151_v40 = vpop.permute.xlu2 %216 }
  0x98   :  { %v756_v45 = vpop.eup %755  ;;  %305 = vmatpush.msra.mxu2 %v754_v43  ;;  %690 = vmatmul.msk.f32.vlgmr.msra.gmra.mxu1 %vm219_vm0, %v1060_v32  ;;  %767 = vtanh.f32 %v149_v24 }
  0x99   :  { %v758_v48 = vpop.eup %757  ;;  %334 = vmatpush.msra.mxu3 %v756_v45  ;;  %694 = vmatmul.msk.f32.vlgmr.msra.gmra.mxu2 %vm219_vm0, %v1060_v32  ;;  %769 = vtanh.f32 %v150_v38 }
  0x9a   :  { %v760_v50 = vpop.eup %759  ;;  %698 = vmatmul.msk.f32.vlgmr.msra.gmra.mxu3 %vm219_vm0, %v1060_v32  ;;  %360 = vmatpush.msrb.mxu0 %v740_v20  ;;  %771 = vtanh.f32 %v139_v41 }
  0x9b   :  { %v762_v54 = vpop.eup %761  ;;  %389 = vmatpush.msrb.mxu1 %v758_v48  ;;  %418 = vmatpush.msrb.mxu2 %v760_v50  ;;  %773 = vtanh.f32 %v140_v44  ;;  %v1155_v44 = vpop.permute.xlu0 %502 }
  0x9c   :  { %v764_v56 = vpop.eup %763  ;;  %447 = vmatpush.msrb.mxu3 %v762_v54  ;;  %775 = vtanh.f32 %v141_v46 }
  0x9d   :  { %v766_v60 = vpop.eup %765  ;;  %361 = vmatpush.msrb.mxu0 %v764_v56  ;;  %777 = vtanh.f32 %v142_v49 }
  0x9e   :  { %v768_v62 = vpop.eup %767  ;;  %390 = vmatpush.msrb.mxu1 %v766_v60  ;;  %779 = vtanh.f32 %v131_v51  ;;  %v1163_v60 = vpop.permute.xlu1 %507 }
  0x9f   :  { %v770_v63 = vpop.eup %769  ;;  %419 = vmatpush.msrb.mxu2 %v768_v62  ;;  %781 = vtanh.f32 %v132_v55  ;;  %687 = vmatmul.msk.f32.gmra.mxu0 %vm219_vm0, %v192_v59 }
  0xa0   :  { %v772_v53 = vpop.eup %771  ;;  %448 = vmatpush.msrb.mxu3 %v770_v63  ;;  %783 = vtanh.f32 %v133_v57  ;;  %691 = vmatmul.msk.f32.gmra.mxu1 %vm219_vm0, %v192_v59 }
  0xa1   :  { %v774_v0 = vpop.eup %773  ;;  %362 = vmatpush.msrb.mxu0 %v772_v53  ;;  %785 = vtanh.f32 %v134_v61  ;;  %695 = vmatmul.msk.f32.gmra.mxu2 %vm219_vm0, %v192_v59 }
  0xa2   :  { %v776_v1 = vpop.eup %775  ;;  %391 = vmatpush.msrb.mxu1 %v774_v0  ;;  %699 = vmatmul.msk.f32.gmra.mxu3 %vm219_vm0, %v192_v59 }
  0xa3   :  { %v778_v58 = vpop.eup %777  ;;  %420 = vmatpush.msrb.mxu2 %v776_v1  ;;  %v1168_v1 = vpop.permute.xlu2 %512 }
  0xa4   :  { %v780_v2 = vpop.eup %779  ;;  %449 = vmatpush.msrb.mxu3 %v778_v58 }
  0xa5   :  { %v782_v4 = vpop.eup %781  ;;  %363 = vmatpush.msrb.mxu0 %v780_v2 }
  0xa6   :  { %v784_v5 = vpop.eup %783  ;;  %392 = vmatpush.msrb.mxu1 %v782_v4 }
  0xa7   :  { %v786_v6 = vpop.eup %785  ;;  %421 = vmatpush.msrb.mxu2 %v784_v5  ;;  %688 = vmatmul.msk.f32.gmra.mxu0 %vm219_vm0, %v193_v3 }
  0xa8   :  { %450 = vmatpush.msrb.mxu3 %v786_v6  ;;  %692 = vmatmul.msk.f32.gmra.mxu1 %vm219_vm0, %v193_v3 }
  0xa9   :  { %696 = vmatmul.msk.f32.gmra.mxu2 %vm219_vm0, %v193_v3 }
  0xaa   :  { %700 = vmatmul.msk.f32.gmra.mxu3 %vm219_vm0, %v193_v3 }
  0xaf   :  { %689 = vmatmul.msk.f32.gmra.mxu0 %vm219_vm0, %v194_v7 }
  0xb0   :  { %693 = vmatmul.msk.f32.gmra.mxu1 %vm219_vm0, %v194_v7 }
  0xb1   :  { %697 = vmatmul.msk.f32.gmra.mxu2 %vm219_vm0, %v194_v7 }
  0xb2   :  { %701 = vmatmul.msk.f32.gmra.mxu3 %vm219_vm0, %v194_v7 }
  0xb7   :  { %702 = vmatmul.msk.f32.vlgmr.msrb.gmra.mxu0 %vm219_vm0, %v1060_v32 }
  0xb8   :  { %706 = vmatmul.msk.f32.vlgmr.msrb.gmra.mxu1 %vm219_vm0, %v1060_v32 }
  0xb9   :  { %710 = vmatmul.msk.f32.vlgmr.msrb.gmra.mxu2 %vm219_vm0, %v1060_v32 }
  0xba   :  { %714 = vmatmul.msk.f32.vlgmr.msrb.gmra.mxu3 %vm219_vm0, %v1060_v32 }
  0xbf   :  { %703 = vmatmul.msk.f32.gmra.mxu0 %vm219_vm0, %v192_v59 }
  0xc0   :  { %707 = vmatmul.msk.f32.gmra.mxu1 %vm219_vm0, %v192_v59 }
  0xc1   :  { %711 = vmatmul.msk.f32.gmra.mxu2 %vm219_vm0, %v192_v59 }
  0xc2   :  { %715 = vmatmul.msk.f32.gmra.mxu3 %vm219_vm0, %v192_v59 }
  0xc7   :  { %704 = vmatmul.msk.f32.gmra.mxu0 %vm219_vm0, %v193_v3 }
  0xc8   :  { %708 = vmatmul.msk.f32.gmra.mxu1 %vm219_vm0, %v193_v3 }
  0xc9   :  { %712 = vmatmul.msk.f32.gmra.mxu2 %vm219_vm0, %v193_v3 }
  0xca   :  { %716 = vmatmul.msk.f32.gmra.mxu3 %vm219_vm0, %v193_v3 }
  0xcf   :  { %705 = vmatmul.msk.f32.gmra.mxu0 %vm219_vm0, %v194_v7 }
  0xd0   :  { %709 = vmatmul.msk.f32.gmra.mxu1 %vm219_vm0, %v194_v7 }
  0xd1   :  { %713 = vmatmul.msk.f32.gmra.mxu2 %vm219_vm0, %v194_v7 }
  0xd2   :  { %717 = vmatmul.msk.f32.gmra.mxu3 %vm219_vm0, %v194_v7 }
 0x114   :  { %v249_v8 = vpop.f32.mrf.mxu0 }
 0x115   :  { %v278_v9 = vpop.f32.mrf.mxu1  ;;  %v250_v37 = vadd.f32 %v249_v8, %v1137_v22 }
 0x116   :  { %v279_v25 = vadd.f32 %v278_v9, %v1137_v22 }
 0x118   :  { %787 = vtanh.f32 %v279_v25 }
 0x11c   :  { %v307_v10 = vpop.f32.mrf.mxu2  ;;  %v252_v11 = vpop.f32.mrf.mxu0 }
 0x11d   :  { %v336_v12 = vpop.f32.mrf.mxu3  ;;  %v281_v13 = vpop.f32.mrf.mxu1  ;;  %v308_v26 = vadd.f32 %v307_v10, %v1137_v22  ;;  %v253_v28 = vadd.f32 %v252_v11, %v1139_v23 }
 0x11e   :  { %v337_v27 = vadd.f32 %v336_v12, %v1137_v22  ;;  %v282_v33 = vadd.f32 %v281_v13, %v1139_v23  ;;  %v788_v43 = vpop.eup %787 }
 0x11f   :  { %789 = vtanh.f32 %v308_v26  ;;  %v521_v58 = vmul.f32 %v788_v43, %v1155_v44 }
 0x120   :  { %791 = vtanh.f32 %v337_v27 }
 0x121   :  { %793 = vtanh.f32 %v253_v28 }
 0x124   :  { %v310_v14 = vpop.f32.mrf.mxu2  ;;  %v255_v15 = vpop.f32.mrf.mxu0 }
 0x125   :  { %v339_v16 = vpop.f32.mrf.mxu3  ;;  %v284_v17 = vpop.f32.mrf.mxu1  ;;  %v311_v31 = vadd.f32 %v310_v14, %v1139_v23  ;;  %v256_v52 = vadd.f32 %v255_v15, %v1147_v36 }
 0x126   :  { %v340_v38 = vadd.f32 %v339_v16, %v1139_v23  ;;  %v285_v34 = vadd.f32 %v284_v17, %v1147_v36  ;;  %v790_v45 = vpop.eup %789  ;;  %v1179_v17 = vpop.permute.xlu0 %517 }
 0x127   :  { %795 = vtanh.f32 %v311_v31  ;;  %v792_v49 = vpop.eup %791  ;;  %v522_v2 = vmul.f32 %v790_v45, %v1155_v44 }
 0x128   :  { %797 = vtanh.f32 %v282_v33  ;;  %v794_v35 = vpop.eup %793  ;;  %v523_v5 = vmul.f32 %v792_v49, %v1155_v44 }
 0x129   :  { %799 = vtanh.f32 %v340_v38  ;;  %v528_v11 = vmul.f32 %v794_v35, %v1163_v60 }
 0x12c   :  { %v313_v18 = vpop.f32.mrf.mxu2  ;;  %v258_v19 = vpop.f32.mrf.mxu0 }
 0x12d   :  { %v342_v20 = vpop.f32.mrf.mxu3  ;;  %v287_v21 = vpop.f32.mrf.mxu1  ;;  %v314_v39 = vadd.f32 %v313_v18, %v1147_v36  ;;  %v259_v57 = vadd.f32 %v258_v19, %v1151_v40 }
 0x12e   :  { %v343_v41 = vadd.f32 %v342_v20, %v1147_v36  ;;  %v288_v54 = vadd.f32 %v287_v21, %v1151_v40  ;;  %v796_v55 = vpop.eup %795 }
 0x12f   :  { %801 = vtanh.f32 %v314_v39  ;;  %v798_v56 = vpop.eup %797  ;;  %v530_v63 = vmul.f32 %v796_v55, %v1163_v60 }
 0x130   :  { %803 = vtanh.f32 %v343_v41  ;;  %v800_v59 = vpop.eup %799  ;;  %v529_v18 = vmul.f32 %v798_v56, %v1163_v60 }
 0x131   :  { %v531_v6 = vmul.f32 %v800_v59, %v1163_v60  ;;  %v570_v19 = vadd.f32 %v530_v63, %v522_v2 }
 0x132   :  { %v561_v41 = vadd.f32 %v529_v18, %v521_v58 }
 0x133   :  { %v579_v28 = vadd.f32 %v531_v6, %v523_v5 }
 0x134   :  { %v316_v29 = vpop.f32.mrf.mxu2  ;;  %v365_v30 = vpop.f32.mrf.mxu0 }
 0x135   :  { %v345_v32 = vpop.f32.mrf.mxu3  ;;  %v394_v24 = vpop.f32.mrf.mxu1  ;;  %v317_v42 = vadd.f32 %v316_v29, %v1151_v40  ;;  %v366_v61 = vadd.f32 %v365_v30, %v1137_v22 }
 0x136   :  { %v346_v46 = vadd.f32 %v345_v32, %v1151_v40  ;;  %v802_v62 = vpop.eup %801  ;;  %v395_v53 = vadd.f32 %v394_v24, %v1137_v22 }
 0x137   :  { %805 = vtanh.f32 %v317_v42  ;;  %v804_v0 = vpop.eup %803  ;;  %v538_v12 = vmul.f32 %v802_v62, %v1168_v1 }
 0x138   :  { %807 = vtanh.f32 %v285_v34 }
 0x139   :  { %809 = vtanh.f32 %v346_v46  ;;  %v571_v32 = vadd.f32 %v570_v19, %v538_v12 }
 0x13a   :  { %811 = vtanh.f32 %v250_v37 }
 0x13b   :  { %813 = vtanh.f32 %v288_v54 }
 0x13c   :  { %v423_v47 = vpop.f32.mrf.mxu2  ;;  %v368_v48 = vpop.f32.mrf.mxu0  ;;  %815 = vtanh.f32 %v256_v52 }
 0x13d   :  { %v452_v50 = vpop.f32.mrf.mxu3  ;;  %v397_v51 = vpop.f32.mrf.mxu1  ;;  %v424_v3 = vadd.f32 %v423_v47, %v1137_v22  ;;  %817 = vtanh.f32 %v259_v57  ;;  %v369_v13 = vadd.f32 %v368_v48, %v1139_v23 }
 0x13e   :  { %v806_v4 = vpop.eup %805  ;;  %v453_v7 = vadd.f32 %v452_v50, %v1137_v22  ;;  %819 = vtanh.f32 %v366_v61  ;;  %v398_v20 = vadd.f32 %v397_v51, %v1139_v23  ;;  %v539_v22 = vmul.f32 %v804_v0, %v1168_v1 }
 0x13f   :  { %v808_v10 = vpop.eup %807  ;;  %821 = vtanh.f32 %v395_v53  ;;  %v546_v25 = vmul.f32 %v806_v4, %v1179_v17 }
 0x140   :  { %v810_v16 = vpop.eup %809  ;;  %823 = vtanh.f32 %v424_v3  ;;  %v537_v29 = vmul.f32 %v808_v10, %v1168_v1  ;;  %v580_v34 = vadd.f32 %v579_v28, %v539_v22 }
 0x141   :  { %v812_v21 = vpop.eup %811  ;;  %825 = vtanh.f32 %v453_v7  ;;  %v547_v24 = vmul.f32 %v810_v16, %v1179_v17  ;;  %v572_v46 = vadd.f32 %v571_v32, %v546_v25 }
 0x142   :  { %v814_v27 = vpop.eup %813  ;;  %827 = vtanh.f32 %v369_v13  ;;  %v520_v39 = vmul.f32 %v812_v21, %v1155_v44  ;;  %v562_v37 = vadd.f32 %v561_v41, %v537_v29 }
 0x143   :  { %v816_v31 = vpop.eup %815  ;;  %829 = vtanh.f32 %v398_v20  ;;  %v545_v45 = vmul.f32 %v814_v27, %v1179_v17  ;;  %v581_v54 = vadd.f32 %v580_v34, %v547_v24  ;;  %v573_v0 = vrot.slane %v572_v46, 4 }
 0x144   :  { %v426_v8 = vpop.f32.mrf.mxu2  ;;  %v371_v9 = vpop.f32.mrf.mxu0  ;;  %v552_v48 = vadd.f32 %v528_v11, %v520_v39  ;;  %v536_v49 = vmul.f32 %v816_v31, %v1168_v1 }
 0x145   :  { %v455_v14 = vpop.f32.mrf.mxu3  ;;  %v400_v15 = vpop.f32.mrf.mxu1  ;;  %v372_v26 = vadd.f32 %v371_v9, %v1147_v36  ;;  %v427_v33 = vadd.f32 %v426_v8, %v1139_v23  ;;  %v563_v53 = vadd.f32 %v562_v37, %v545_v45  ;;  %v582_v4 = vrot.slane %v581_v54, 4 }
 0x146   :  { %v401_v30 = vadd.f32 %v400_v15, %v1147_v36  ;;  %v818_v38 = vpop.eup %817  ;;  %v456_v42 = vadd.f32 %v455_v14, %v1139_v23  ;;  %v553_v2 = vadd.f32 %v552_v48, %v536_v49 }
 0x147   :  { %v820_v43 = vpop.eup %819  ;;  %831 = vtanh.f32 %v372_v26  ;;  %v544_v59 = vmul.f32 %v818_v38, %v1179_v17  ;;  %v564_v9 = vrot.slane %v563_v53, 4  ;;  %v583_v16 = vadd.f32 %v582_v4, %v581_v54 }
 0x148   :  { %v822_v47 = vpop.eup %821  ;;  %833 = vtanh.f32 %v401_v30  ;;  %v524_v12 = vmul.f32 %v820_v43, %v1155_v44 }
 0x149   :  { %v824_v35 = vpop.eup %823  ;;  %835 = vtanh.f32 %v427_v33  ;;  %v554_v6 = vadd.f32 %v553_v2, %v544_v59  ;;  %v525_v18 = vmul.f32 %v822_v47, %v1155_v44  ;;  %v565_v29 = vadd.f32 %v564_v9, %v563_v53 }
 0x14a   :  { %v826_v57 = vpop.eup %825  ;;  %837 = vtanh.f32 %v456_v42  ;;  %v584_v39 = vrot.slane %v583_v16, 2 }
 0x14b   :  { %v828_v63 = vpop.eup %827  ;;  %v555_v25 = vrot.slane %v554_v6, 4  ;;  %v527_v47 = vmul.f32 %v826_v57, %v1155_v44 }
 0x14c   :  { %v429_v50 = vpop.f32.mrf.mxu2  ;;  %v374_v51 = vpop.f32.mrf.mxu0  ;;  %v532_v7 = vmul.f32 %v828_v63, %v1163_v60 }
 0x14d   :  { %v430_v55 = vadd.f32 %v429_v50, %v1147_v36  ;;  %v458_v23 = vpop.f32.mrf.mxu3  ;;  %v375_v52 = vadd.f32 %v374_v51, %v1151_v40  ;;  %v403_v56 = vpop.f32.mrf.mxu1  ;;  %v556_v37 = vadd.f32 %v555_v25, %v554_v6 }
 0x14e   :  { %v459_v61 = vadd.f32 %v458_v23, %v1147_v36  ;;  %v404_v62 = vadd.f32 %v403_v56, %v1151_v40  ;;  %v830_v58 = vpop.eup %829  ;;  %v574_v36 = vadd.f32 %v573_v0, %v572_v46  ;;  %v588_v26 = vadd.f32 %v532_v7, %v524_v12  ;;  %v628_v7 = vpop.permute.xlu1 %627 }
 0x14f   :  { %839 = vtanh.f32 %v430_v55  ;;  %v832_v3 = vpop.eup %831  ;;  %v533_v10 = vmul.f32 %v830_v58, %v1163_v60  ;;  %v566_v46 = vrot.slane %v565_v29, 2 }
 0x150   :  { %841 = vtanh.f32 %v459_v61  ;;  %v834_v5 = vpop.eup %833  ;;  %v540_v13 = vmul.f32 %v832_v3, %v1168_v1  ;;  %v575_v30 = vrot.slane %v574_v36, 2 }
 0x151   :  { %843 = vtanh.f32 %v375_v52  ;;  %v836_v8 = vpop.eup %835  ;;  %v541_v19 = vmul.f32 %v834_v5, %v1168_v1  ;;  %v597_v31 = vadd.f32 %v533_v10, %v525_v18 }
 0x152   :  { %845 = vtanh.f32 %v404_v62  ;;  %v838_v11 = vpop.eup %837  ;;  %v534_v24 = vmul.f32 %v836_v8, %v1163_v60  ;;  %v589_v33 = vadd.f32 %v588_v26, %v540_v13  ;;  %v576_v55 = vadd.f32 %v575_v30, %v574_v36 }
 0x153   :  { %v535_v41 = vmul.f32 %v838_v11, %v1163_v60  ;;  %v598_v42 = vadd.f32 %v597_v31, %v541_v19  ;;  %v585_v60 = vadd.f32 %v584_v39, %v583_v16  ;;  %v567_v62 = vadd.f32 %v566_v46, %v565_v29 }
 0x154   :  { %v432_v14 = vpop.f32.mrf.mxu2  ;;  %v577_v58 = vrot.slane %v576_v55, 1  ;;  %v630_v16 = vperm.slane %v628_v7, 0 }
 0x155   :  { %v840_v15 = vpop.eup %839  ;;  %v433_v20 = vadd.f32 %v432_v14, %v1151_v40  ;;  %v461_v21 = vpop.f32.mrf.mxu3  ;;  %v615_v23 = vadd.f32 %v535_v41, %v527_v47  ;;  %v586_v2 = vrot.slane %v585_v60, 1  ;;  %v568_v8 = vrot.slane %v567_v62, 1 }
 0x156   :  { %v842_v22 = vpop.eup %841  ;;  %v462_v27 = vadd.f32 %v461_v21, %v1151_v40  ;;  %v526_v40 = vmul.f32 %v824_v35, %v1155_v44  ;;  %v542_v34 = vmul.f32 %v840_v15, %v1168_v1  ;;  %v578_v15 = vadd.f32 %v577_v58, %v576_v55 }
 0x157   :  { %v844_v28 = vpop.eup %843  ;;  %847 = vtanh.f32 %v433_v20  ;;  %v543_v48 = vmul.f32 %v842_v22, %v1168_v1  ;;  %v557_v1 = vrot.slane %v556_v37, 2  ;;  %v569_v20 = vadd.f32 %v568_v8, %v567_v62 }
 0x158   :  { %v846_v32 = vpop.eup %845  ;;  %v548_v38 = vmul.f32 %v844_v28, %v1179_v17  ;;  %849 = vtanh.f32 %v462_v27  ;;  %v606_v50 = vadd.f32 %v534_v24, %v526_v40  ;;  %v633_v28 = vadd.f32 %v630_v16, %v578_v15 }
 0x159   :  { %v549_v43 = vmul.f32 %v846_v32, %v1179_v17  ;;  %v616_v63 = vadd.f32 %v615_v23, %v543_v48  ;;  %v558_v10 = vadd.f32 %v557_v1, %v556_v37  ;;  %v632_v32 = vadd.f32 %v630_v16, %v569_v20 }
 0x15a   :  { %v590_v45 = vadd.f32 %v589_v33, %v548_v38  ;;  %v607_v59 = vadd.f32 %v606_v50, %v542_v34 }
 0x15b   :  { %v599_v49 = vadd.f32 %v598_v42, %v549_v43  ;;  %v559_v25 = vrot.slane %v558_v10, 1  ;;  %v648_v42 = vrot.slane %v633_v28, 6 }
 0x15c   :  { %v591_v51 = vrot.slane %v590_v45, 4 }
 0x15d   :  { %v848_v54 = vpop.eup %847  ;;  %v600_v52 = vrot.slane %v599_v49, 4  ;;  %v560_v38 = vadd.f32 %v559_v25, %v558_v10 }
 0x15e   :  { %v850_v56 = vpop.eup %849  ;;  %v592_v35 = vadd.f32 %v591_v51, %v590_v45  ;;  %v550_v61 = vmul.f32 %v848_v54, %v1179_v17  ;;  %v647_v45 = vrot.slane %v632_v32, 7 }
 0x15f   :  { %v601_v53 = vadd.f32 %v600_v52, %v599_v49  ;;  %v551_v44 = vmul.f32 %v850_v56, %v1179_v17  ;;  %v587_v17 = vadd.f32 %v586_v2, %v585_v60  ;;  %v631_v48 = vadd.f32 %v630_v16, %v560_v38 }
 0x160   :  { %v593_v57 = vrot.slane %v592_v35, 2  ;;  %v608_v0 = vadd.f32 %v607_v59, %v550_v61 }
 0x161   :  { %v602_v3 = vrot.slane %v601_v53, 2  ;;  %v617_v4 = vadd.f32 %v616_v63, %v551_v44  ;;  %v634_v29 = vadd.f32 %v630_v16, %v587_v17  ;;  %v655_v51 = vsel %vm654_vm1, %v631_v48, %v647_v45 }
 0x162   :  { %v594_v5 = vadd.f32 %v593_v57, %v592_v35  ;;  %v609_v6 = vrot.slane %v608_v0, 4 }
 0x163   :  { %v603_v9 = vadd.f32 %v602_v3, %v601_v53  ;;  %v618_v36 = vrot.slane %v617_v4, 4  ;;  %v649_v43 = vrot.slane %v634_v29, 5 }
 0x164   :  { %v595_v11 = vrot.slane %v594_v5, 1  ;;  %v610_v12 = vadd.f32 %v609_v6, %v608_v0 }
 0x165   :  { %v604_v13 = vrot.slane %v603_v9, 1  ;;  %v619_v14 = vadd.f32 %v618_v36, %v617_v4  ;;  %v657_v50 = vsel %vm656_vm2, %v648_v42, %v649_v43 }
 0x166   :  { %v611_v18 = vrot.slane %v610_v12, 2  ;;  %v596_v21 = vadd.f32 %v595_v11, %v594_v5  ;;  %v659_v60 = vsel %vm658_vm5, %v655_v51, %v657_v50 }
 0x167   :  { %v620_v19 = vrot.slane %v619_v14, 2  ;;  %v605_v22 = vadd.f32 %v604_v13, %v603_v9 }
 0x168   :  { %v612_v26 = vadd.f32 %v611_v18, %v610_v12  ;;  %v635_v24 = vadd.f32 %v630_v16, %v596_v21 }
 0x169   :  { %v621_v27 = vadd.f32 %v620_v19, %v619_v14  ;;  %v636_v33 = vadd.f32 %v630_v16, %v605_v22 }
 0x16a   :  { %v613_v30 = vrot.slane %v612_v26, 1  ;;  %v650_v46 = vrot.slane %v635_v24, 4 }
 0x16b   :  { %v622_v31 = vrot.slane %v621_v27, 1  ;;  %v651_v47 = vrot.slane %v636_v33, 3 }
 0x16c   :  { %v614_v39 = vadd.f32 %v613_v30, %v612_v26 }
 0x16d   :  { %v623_v41 = vadd.f32 %v622_v31, %v621_v27  ;;  %v661_v54 = vsel %vm660_vm3, %v650_v46, %v651_v47 }
 0x16e   :  { %v637_v40 = vadd.f32 %v630_v16, %v614_v39 }
 0x16f   :  { %v638_v34 = vadd.f32 %v630_v16, %v623_v41 }
 0x170   :  { %v652_v49 = vrot.slane %v637_v40, 2 }
 0x171   :  { %v653_v37 = vrot.slane %v638_v34, 1 }
 0x173   :  { %v663_v55 = vsel %vm662_vm4, %v652_v49, %v653_v37 }
 0x174   :  { %v665_v23 = vsel %vm664_vm6, %v661_v54, %v663_v55 }
 0x175   :  { %v667_v52 = vsel %vm666_vm7, %v659_v60, %v665_v23 }
 0x176   :  { %669 = vst [vmem:[#allocation3] sm:$0xff] %v667_v52 }
 0x177   :  { %680 = dma.vmem_to_hbm [thread:$0]  %s676_s15, 128, %s678_s18, [#allocation4]  }
 0x178   :  { %875 = dma.done.wait [#allocation4], 128  }
 0x179   :  { %876 = vsyncadd [#allocation4], 4294967168 }
 0x17a   :  { %685 = vsyncpa [#allocation4], 1 }

</bundles_post_ra>
